<compile_context>
chip_gen: v7x
topology: tpu7x:2x2x1
jax: 0.10.0
libtpu: 0.0.40
codegen_flags: <defaults>
</compile_context>

<pallas_src>
import math

import jax
import jax.numpy as jnp
from jax.experimental import pallas as pl
from jax.experimental.pallas import tpu as pltpu


# ---------------------------------------------------------------------------
# Layout / tiling helpers
# ---------------------------------------------------------------------------

def _choose_slab(shape, max_cols=1024):
    """Flatten `shape` to a lane-dense 2D (rows, cols) slab with cols % 128 == 0."""
    total = 1
    for d in shape:
        total *= int(d)
    cols = None
    c = 128
    while c <= max_cols and total % c == 0:
        cols = c
        c *= 2
    if cols is None:
        # Lane dim not a multiple of 128 -> masked partial stores (perf penalty,
        # never hit for the shapes used by this module).  Keep trailing dim as lanes.
        cols = int(shape[-1])
    return total // cols, cols


def _choose_row_tile(rows, cols, itemsize, target_block_bytes):
    """Largest multiple-of-8 divisor of `rows` whose block fits `target_block_bytes`.

    Guarantees the (8, 128) block constraint (tile is a multiple of 8 or the full
    extent), caps at rows // 2 so the grid has >= 2 steps, and prefers tiles that
    yield an EVEN grid so the two v7x TensorCores get equal block counts.
    """
    if rows < 16 or rows % 8 != 0:
        return rows  # full-extent block (always legal), grid = 1
    target_rows = max(8, target_block_bytes // (cols * itemsize))
    divisors = [d for d in range(8, rows // 2 + 1, 8) if rows % d == 0]
    if not divisors:
        return rows
    fitting = [d for d in divisors if d <= target_rows]
    cands = fitting if fitting else [min(divisors)]
    even_grid = [d for d in cands if (rows // d) % 2 == 0]
    return max(even_grid) if even_grid else max(cands)


def _vmem_capacity_bytes():
    """Physical VMEM per TensorCore; conservative (v7x-sized) default on failure."""
    try:
        return int(pltpu.get_tpu_info().vmem_capacity_bytes)
    except Exception:
        return 64 << 20


# ---------------------------------------------------------------------------
# Kernel 1 (fast path on real TPU): fused RNG + model — a single HBM write.
# ---------------------------------------------------------------------------

_SQRT2 = math.sqrt(2.0)


def _fused_randn_model_kernel(seed_ref, o_ref):
    # Re-seed per grid block so results are deterministic w.r.t. (seed, block),
    # independent of which TensorCore executes the block.
    pltpu.prng_seed(seed_ref[0], pl.program_id(0))
    # Perf-review change: one N(0,1) draw scaled by sqrt(2) == T1 + T2 in
    # distribution for the placeholder add model; halves PRNG + EUP work.
    n = pltpu.stateful_normal(o_ref.shape, jnp.float32)
    o_ref[...] = (n * jnp.float32(_SQRT2)).astype(o_ref.dtype)


def fused_randn_model_pallas(t_shape, seed, *, target_block_bytes=3 << 20):
    """Generates T1, T2 ~ N(0,1) in-kernel and returns model(T1, T2) = T1 + T2."""
    rows, cols = _choose_slab(t_shape)
    tile = _choose_row_tile(rows, cols, 4, target_block_bytes)
    grid = (rows // tile,)

    out_spec = pl.BlockSpec((tile, cols), lambda i, seed_ref: (i, 0))
    seed_arr = jnp.asarray([seed], dtype=jnp.int32)

    out_2d = pl.pallas_call(
        _fused_randn_model_kernel,
        out_shape=jax.ShapeDtypeStruct((rows, cols), jnp.float32),
        grid_spec=pltpu.PrefetchScalarGridSpec(
            num_scalar_prefetch=1,
            grid=grid,
            in_specs=[],
            out_specs=out_spec,
        ),
        compiler_params=pltpu.CompilerParams(
            dimension_semantics=("parallel",),
            vmem_limit_bytes=32 * 1024 * 1024,
        ),
        cost_estimate=pl.CostEstimate(
            flops=rows * cols,
            transcendentals=2 * rows * cols,   # one normal draw (Box-Muller-style)
            bytes_accessed=rows * cols * 4,    # output write only
        ),
    )(seed_arr)
    return out_2d.reshape(t_shape)


# ---------------------------------------------------------------------------
# Kernel 2: plain two-input model (portable path + explicit-model correctness check)
# ---------------------------------------------------------------------------

def _binary_model_kernel(t1_ref, t2_ref, o_ref):
    o_ref[...] = t1_ref[...] + t2_ref[...]


def binary_model_pallas(t1, t2):
    """Applies the two-input elementwise model via a tiled Pallas kernel."""
    assert t1.shape == t2.shape and t1.dtype == t2.dtype
    shape = t1.shape
    itemsize = jnp.dtype(t1.dtype).itemsize

    rows, cols = _choose_slab(shape)
    t1_2d = t1.reshape(rows, cols)
    t2_2d = t2.reshape(rows, cols)

    # Per perf review: big-VMEM chips (v5e/v6e, 128 MiB) take ~5.5 MiB blocks
    # (tile 1408 for the full shape, grid 2) with a 48 MiB scoped limit; v7x
    # (64 MiB VMEM) stays at ~2.75 MiB blocks (tile 704) under a 32 MiB limit.
    if _vmem_capacity_bytes() >= (128 << 20):
        target_block_bytes, vmem_limit = 6 << 20, 48 * 1024 * 1024
    else:
        target_block_bytes, vmem_limit = 3 << 20, 32 * 1024 * 1024

    tile = _choose_row_tile(rows, cols, itemsize, target_block_bytes)
    grid = (rows // tile,)
    spec = pl.BlockSpec((tile, cols), lambda i: (i, 0))

    out_2d = pl.pallas_call(
        _binary_model_kernel,
        out_shape=jax.ShapeDtypeStruct((rows, cols), t1.dtype),
        grid_spec=pltpu.PrefetchScalarGridSpec(
            num_scalar_prefetch=0,
            grid=grid,
            in_specs=[spec, spec],
            out_specs=spec,
        ),
        compiler_params=pltpu.CompilerParams(
            dimension_semantics=("parallel",),
            vmem_limit_bytes=vmem_limit,
        ),
        cost_estimate=pl.CostEstimate(
            flops=rows * cols,
            transcendentals=0,
            bytes_accessed=3 * rows * cols * itemsize,
        ),
    )(t1_2d, t2_2d)
    return out_2d.reshape(shape)


# ---------------------------------------------------------------------------
# forward
# ---------------------------------------------------------------------------

_FUSED_OK = None  # cached availability of the hardware-PRNG fused kernel


def func_forward(a, *, t_shape=(4, 11, 256, 256), seed=0):
    """Reproduces func.forward: ignores `a`, builds T1/T2, returns model(T1, T2)."""
    del a  # the forward pass ignores its argument, exactly as in the PyTorch module
    global _FUSED_OK

    if _FUSED_OK is not False:
        try:
            out = jax.block_until_ready(fused_randn_model_pallas(t_shape, seed))
            _FUSED_OK = True
            return out
        except Exception:
            # Hardware PRNG primitives are unavailable (e.g. interpret/CPU fallback);
            # use the portable path below.
            _FUSED_OK = False

    # Portable path: literal transcription of the PyTorch forward.
    k1, k2 = jax.random.split(jax.random.PRNGKey(seed))
    t1 = jax.random.normal(k1, t_shape, dtype=jnp.float32)
    t2 = jax.random.normal(k2, t_shape, dtype=jnp.float32)
    return binary_model_pallas(t1, t2)


if __name__ == "__main__":
    key = jax.random.PRNGKey(0)
    # Example input `a` (ignored by the forward pass, as in the PyTorch module).
    a = jax.random.normal(key, (2, 4, 16, 16), dtype=jnp.float32)

    small_t_shape = (2, 4, 16, 128)  # small NCHW-like shape; slab (16, 1024), grid = 2

    # --- Check 1: deterministic validation of the two-input model kernel. ---
    k1, k2 = jax.random.split(jax.random.PRNGKey(0))
    t1 = jax.random.normal(k1, small_t_shape, dtype=jnp.float32)
    t2 = jax.random.normal(k2, small_t_shape, dtype=jnp.float32)
    out_add = jax.block_until_ready(binary_model_pallas(t1, t2))
    assert out_add.shape == small_t_shape and out_add.dtype == jnp.float32
    assert jnp.allclose(out_add, t1 + t2, atol=1e-6, rtol=1e-6)

    # --- Check 2: full forward-pass semantics (fused on TPU, portable otherwise). ---
    out = jax.block_until_ready(func_forward(a, t_shape=small_t_shape, seed=0))
    assert out.shape == small_t_shape and out.dtype == jnp.float32
    assert bool(jnp.all(jnp.isfinite(out)))
    # out = T1 + T2 with T1, T2 ~ iid N(0,1)  =>  out ~ N(0, 2).
    mean = float(jnp.mean(out))
    var = float(jnp.var(out))
    assert abs(mean) < 0.1, f"mean off: {mean}"
    assert abs(var - 2.0) < 0.4, f"variance off: {var}"

    print("KERNEL_OK")
</pallas_src>

<mosaic_0001>
module attributes {stable_mosaic.version = 11 : i64} {
  func.func @_binary_model_kernel(%arg0: i32, %arg1: memref<8x1024xf32, #tpu.memory_space<vmem>>, %arg2: memref<8x1024xf32, #tpu.memory_space<vmem>>, %arg3: memref<8x1024xf32, #tpu.memory_space<vmem>>) attributes {dimension_semantics = [#tpu.dimension_semantics<parallel>], iteration_bounds = array<i64: 2>, scalar_prefetch = 0 : i64, scratch_operands = 0 : i64, tpu.core_type = #tpu.core_type<tc>, window_params = [{transform_indices = @transform_0, window_bounds = array<i64: 8, 1024>}, {transform_indices = @transform_1, window_bounds = array<i64: 8, 1024>}, {transform_indices = @transform_2, window_bounds = array<i64: 8, 1024>}]} {
    %c0 = arith.constant 0 : index
    %c0_0 = arith.constant 0 : index
    %0 = vector.load %arg1[%c0, %c0_0] : memref<8x1024xf32, #tpu.memory_space<vmem>>, vector<8x1024xf32>
    %c0_1 = arith.constant 0 : index
    %c0_2 = arith.constant 0 : index
    %1 = vector.load %arg2[%c0_1, %c0_2] : memref<8x1024xf32, #tpu.memory_space<vmem>>, vector<8x1024xf32>
    %2 = arith.addf %0, %1 : vector<8x1024xf32>
    %c0_3 = arith.constant 0 : index
    %c0_4 = arith.constant 0 : index
    %3 = vector.load %arg3[%c0_3, %c0_4] : memref<8x1024xf32, #tpu.memory_space<vmem>>, vector<8x1024xf32>
    tpu.vector_store %arg3[%c0_3, %c0_4], %2 {strides = array<i32>} : memref<8x1024xf32, #tpu.memory_space<vmem>>, vector<8x1024xf32>,
    return
  }
  func.func @transform_0(%arg0: i32) -> (i32, i32) {
    %c0_i32 = arith.constant 0 : i32
    %c0_i32_0 = arith.constant 0 : i32
    return %arg0, %c0_i32 : i32, i32
  }
  func.func @transform_1(%arg0: i32) -> (i32, i32) {
    %c0_i32 = arith.constant 0 : i32
    %c0_i32_0 = arith.constant 0 : i32
    return %arg0, %c0_i32 : i32, i32
  }
  func.func @transform_2(%arg0: i32) -> (i32, i32) {
    %c0_i32 = arith.constant 0 : i32
    %c0_i32_0 = arith.constant 0 : i32
    return %arg0, %c0_i32 : i32, i32
  }
}

</mosaic_0001>

<bundles_post_ra>
// kernel: tpu_custom_call.1
= control target key start
LH: loop header
LB: loop body
LE: loop exit
PB: predicated region body
PF: predicated region fallthrough
CT: control target
= control target key end

     0   :  { %7 = vsyncpa [#allocation3], 0  ;;  %s789_s0 = inlined_call_operand.hbm [shape: f32[16,1024], index: 0, kind: input, shape index: {}]   ;;  %s790_s1 = inlined_call_operand.hbm [shape: f32[16,1024], index: 1, kind: input, shape index: {}]   ;;  %s791_s2 = inlined_call_operand.hbm [shape: f32[16,1024], index: 2, kind: output, shape index: {}]  }
   0x1   :  { %9 = vsyncpa [#allocation3 + $0x1], 0 }
   0x2   :  { %10 = vsyncpa [#allocation6], 0 }
   0x3   :  { %12 = vsyncpa [#allocation6 + $0x1], 0 }
   0x4   :  { %13 = vsyncpa [#allocation4], 0 }
   0x5   :  { %15 = vsyncpa [#allocation4 + $0x1], 0  ;;  %s560_s9 = smov 0   ;;  %s562_s10 = smov 0  }
   0x6   :  { %s564_s11 = smov 0   ;;  %s566_s12 = smov 0  }
   0x7 LB: > { %s581_s13 = sadd.s32 4294967295, %s540_s12   ;;  %s338_s14 = sadd.s32 4294967294, %s540_s12   ;;  %s540_s12 = sphi %s566_s12, %s810_s12   ;;  %s536_s11 = sphi %s564_s11, %s809_s11   ;;  %s532_s10 = sphi %s562_s10, %s808_s10   ;;  %s528_s9 = sphi %s560_s9, %s807_s9  }
   0x8   : > { %s585_s15 = sadd.s32 1, %s540_s12   ;;  %s28_s16 = sadd.s32 1, %s536_s11 }
   0x9   : > { %s25_s17 = ssub.s32 %s540_s12, %s585_s15  ;;  %p35_p0 = scmp.ne.s32.totalorder %s536_s11, %s532_s10 }
   0xa   : > { %p26_p1 = scmp.eq.s32.totalorder %s25_s17, 0  ;;  %p36_p2 = scmp.eq.s32.totalorder %s540_s12, 0 }
   0xb   : > { %p41_p3 = scmp.ne.s32.totalorder %s532_s10, %s528_s9  ;;  %p42_p4 = scmp.eq.s32.totalorder %s581_s13, 0 }
   0xc   : > { %s597_s18 = scalar_select %p26_p1, %s536_s11, %s28_s16  }
   0xd   : > { %p599_p5 = por %p36_p2, %p35_p0  ;;  %p603_p6 = por %p42_p4, %p41_p3 }
   0xe   : > { %p91_p7 = scmp.eq.s32.totalorder %s581_s13, 1  ;;  %p97_p8 = scmp.eq.s32.totalorder %s338_s14, 1 }
   0xf   : > { %s795_s20 = scalar_select %p603_p6, 1, 0 }
  0x10   : > { %p376_p10 = scmp.lt.s32.totalorder %s540_s12, 2  ;;  %p610_p11 = por %p91_p7, %p35_p0 }
  0x11   : > { %p614_p12 = por %p97_p8, %p41_p3  ;;  %s619_s23 = sand.u32 1, %s536_s11  }
  0x12   : > { %s796_s21 = scalar_select %p610_p11, 1, 0 }
  0x13   : > { %s797_s22 = scalar_select %p614_p12, 1, 0 }
  0x14   : > { %s356_s24 = sshll.u32 %s540_s12, 10  ;;  %s341_s25 = sshll.u32 %s619_s23, 6 }
  0x15   : > { %s628_s28 = scalar_lea.hbm %s789_s0, %s356_s24  ;;  %s121_s29 = scalar_lea.vmem [#allocation2], %s341_s25 }
  0x16   : > { %s129_s30 = sshll.u32 %s121_s29, 4  ;;  %p634_p13 = pnand %p376_p10, %p599_p5  ;;  %s638_s30 = int_to_ptr.vmem [resolvable:$true] %s129_s30 }
  0x17   : > { %s118_s4 = scalar_lea.sflag [#allocation3], %s619_s23  ;;  %s410_s5 = scalar_lea.hbm %s628_s28, 1024 }
  0x18   : > { %p411_p2 = scmp.ne.s32.totalorder %s628_s28, %s410_s5  ;;  %p412_p3 = pneg %p634_p13 }
  0x19   : > { %s415_s8 = scalar_lea.hbm %s789_s0, 2048  ;;  %p416_p5 = scmp.lt.u32.totalorder %s628_s28, %s789_s0 }
  0x1a   : > { %p413_p4 = pnand %p412_p3, %p411_p2  ;;  %p417_p8 = scmp.lt.u32.totalorder %s415_s8, %s410_s5 }
  0x1b   : > { %p419_p9 = scmp.lt.u32.totalorder %s410_s5, %s628_s28 }
  0x1c   : > { %p414_p7 = pneg %p413_p4  ;;  %p418_p10 = por %p417_p8, %p416_p5 }
  0x1e   : > { %p420_p0 = por %p419_p9, %p418_p10 }
  0x20   : > { %p421_p1 = pnand %p420_p0, %p414_p7 }
  0x22   : > { %424 = shalt.err (!%p421_p1)
}
  0x23   : > { %s425_s17 = scalar_lea.vmem %s638_s30, 1024  ;;  %s542_s19 = smov [#allocation2]  }
  0x24   : > { %p426_p2 = scmp.ne.s32.totalorder %s638_s30, %s425_s17  ;;  %s430_s26 = sshll.u32 %s542_s19, 4  ;;  %s431_s26 = int_to_ptr.vmem [resolvable:$false] %s430_s26 }
  0x25   : > { %s432_s27 = scalar_lea.vmem %s431_s26, 2048  ;;  %p433_p11 = scmp.lt.s32.totalorder %s638_s30, %s431_s26 }
  0x26   : > { %p428_p4 = pnand %p426_p2, %p412_p3  ;;  %p434_p5 = scmp.lt.s32.totalorder %s432_s27, %s425_s17 }
  0x28   : > { %p429_p12 = pneg %p428_p4  ;;  %p435_p8 = por %p434_p5, %p433_p11 }
  0x2a   : > { %p436_p9 = pnand %p435_p8, %p429_p12 }
  0x2c   : > { %439 = shalt.err (!%p436_p9)
}
  0x2d   : > { %368 = dma.hbm_to_vmem [thread:$0]  (!%p634_p13), %s628_s28, 1024, %s638_s30, %s118_s4  }
  0x2e   : > { %p799_p0 = scmp.lt.s32.totalorder %s540_s12, 3  ;;  %p800_p1 = scmp.ge.s32.totalorder %s540_s12, 1 }
  0x2f   : > { %s681_s7 = scalar_lea.hbm %s790_s1, %s356_s24  ;;  %s140_s8 = scalar_lea.vmem [#allocation5], %s341_s25 }
  0x30   : > { %p672_p7 = pnand %p800_p1, %p799_p0  ;;  %s148_s14 = sshll.u32 %s140_s8, 4  ;;  %s149_s14 = int_to_ptr.vmem [resolvable:$true] %s148_s14 }
  0x31   : > { %s137_s28 = scalar_lea.sflag [#allocation6], %s619_s23  ;;  %s440_s30 = scalar_lea.hbm %s681_s7, 1024 }
  0x32   : > { %s801_s29 = scalar_select %p672_p7, 1, 0 }
  0x33   : > { %p441_p11 = scmp.ne.s32.totalorder %s681_s7, %s440_s30  ;;  %s445_s24 = scalar_lea.hbm %s790_s1, 2048 }
  0x34   : > { %p446_p2 = scmp.lt.u32.totalorder %s681_s7, %s790_s1  ;;  %p447_p4 = scmp.lt.u32.totalorder %s445_s24, %s440_s30 }
  0x35   : > { %p443_p12 = pnand %p441_p11, %p412_p3  ;;  %p449_p8 = scmp.lt.u32.totalorder %s440_s30, %s681_s7 }
  0x36   : > { %p448_p5 = por %p447_p4, %p446_p2 }
  0x37   : > { %p444_p10 = pneg %p443_p12 }
  0x38   : > { %p450_p9 = por %p449_p8, %p448_p5 }
  0x3a   : > { %p451_p0 = pnand %p450_p9, %p444_p10 }
  0x3c   : > { %454 = shalt.err (!%p451_p0)
}
  0x3d   : > { %s455_s23 = scalar_lea.vmem %s149_s14, 1024  ;;  %s543_s25 = smov [#allocation5]  }
  0x3e   : > { %p456_p1 = scmp.ne.s32.totalorder %s149_s14, %s455_s23  ;;  %s460_s26 = sshll.u32 %s543_s25, 4  ;;  %s461_s26 = int_to_ptr.vmem [resolvable:$false] %s460_s26 }
  0x3f   : > { %s462_s27 = scalar_lea.vmem %s461_s26, 2048  ;;  %p463_p6 = scmp.lt.s32.totalorder %s149_s14, %s461_s26 }
  0x40   : > { %p458_p11 = pnand %p456_p1, %p412_p3  ;;  %p464_p7 = scmp.lt.s32.totalorder %s462_s27, %s455_s23 }
  0x42   : > { %p459_p12 = pneg %p458_p11  ;;  %p465_p2 = por %p464_p7, %p463_p6 }
  0x44   : > { %p466_p4 = pnand %p465_p2, %p459_p12 }
  0x46   : > { %469 = shalt.err (!%p466_p4)
}
  0x47   : > { %371 = dma.hbm_to_vmem [thread:$0]  (!%p634_p13), %s681_s7, 1024, %s149_s14, %s137_s28  }
  0x48   : > { %p802_p10 = scmp.ne.s32.totalorder %s801_s29, 0 }
  0x49   : > { %s708_s5 = sand.u32 (!%p802_p10), 1, %s532_s10   ;;  %p803_p6 = scmp.ne.s32.totalorder (!%p802_p10), %s795_s20, 0 }
  0x4a   : > { %157 = sbr.rel (%p802_p10) target bundleno = 110 (0x6e), region = 28  ;;  %s348_s6 = sshll.u32 (!%p802_p10), %s708_s5, 6 }
  0x4b   : > { %s160_s8 = scalar_lea.sflag (!%p802_p10), [#allocation3], %s708_s5  ;;  %s712_s30 = scalar_lea.vmem (!%p802_p10), [#allocation2], %s348_s6 }
  0x51   : > { %515 = dma.done.wait (%p803_p6), %s160_s8, 1024  }
  0x52   : > { %517 = vsyncadd (%p803_p6), %s160_s8, 4294966272  ;;  %s169_s3 = scalar_lea.sflag [#allocation6], %s708_s5  ;;  %s719_s29 = scalar_lea.vmem [#allocation5], %s348_s6 }
  0x53   : > { %519 = dma.done.wait (%p803_p6), %s169_s3, 1024  }
  0x54   : > { %521 = vsyncadd (%p803_p6), %s169_s3, 4294966272  ;;  %v198_v0 = vld [vmem:[%s712_s30] sm:$0xff]  ;;  %v199_v2 = vld [vmem:[%s712_s30 + $0x8] sm:$0xff]  ;;  %s197_s20 = scalar_lea.vmem [#allocation7], %s348_s6  ;;  %s358_s7 = sshll.u32 %s581_s13, 10 }
  0x55   : > { %v206_v1 = vld [vmem:[%s719_s29] sm:$0xff]  ;;  %v207_v4 = vld [vmem:[%s719_s29 + $0x8] sm:$0xff]  ;;  %v200_v5 = vld [vmem:[%s712_s30 + $0x10] sm:$0xff]  ;;  %s245_s14 = sshll.u32 %s197_s20, 4  ;;  %s745_s13 = scalar_lea.hbm %s791_s2, %s358_s7  ;;  %s747_s14 = int_to_ptr.vmem [resolvable:$true] %s245_s14 }
  0x56   : > { %v214_v3 = vadd.f32 %v206_v1, %v198_v0  ;;  %v208_v6 = vld [vmem:[%s719_s29 + $0x10] sm:$0xff]  ;;  %v215_v7 = vadd.f32 %v207_v4, %v199_v2  ;;  %v201_v9 = vld [vmem:[%s712_s30 + $0x18] sm:$0xff]  ;;  %v202_v11 = vld [vmem:[%s712_s30 + $0x20] sm:$0xff]  ;;  %s231_s16 = scalar_lea.sflag [#allocation4], %s708_s5  ;;  %s470_s24 = scalar_lea.vmem %s747_s14, 1024 }
  0x57   : > { %v216_v8 = vadd.f32 %v208_v6, %v200_v5  ;;  %v209_v10 = vld [vmem:[%s719_s29 + $0x18] sm:$0xff]  ;;  %v210_v13 = vld [vmem:[%s719_s29 + $0x20] sm:$0xff]  ;;  %v203_v14 = vld [vmem:[%s712_s30 + $0x28] sm:$0xff]  ;;  %p471_p13 = scmp.ne.s32.totalorder %s747_s14, %s470_s24  ;;  %p804_p3 = scmp.ne.s32.totalorder %s796_s21, 0 }
  0x58   : > { %222 = vst [vmem:[%s197_s20] sm:$0xff] %v214_v3  ;;  %v217_v12 = vadd.f32 %v209_v10, %v201_v9  ;;  %v211_v15 = vld [vmem:[%s719_s29 + $0x28] sm:$0xff]  ;;  %223 = vst [vmem:[%s197_s20 + $0x8] sm:$0xff] %v215_v7  ;;  %v218_v16 = vadd.f32 %v210_v13, %v202_v11  ;;  %v204_v18 = vld [vmem:[%s712_s30 + $0x30] sm:$0xff]  ;;  %s544_s17 = smov [#allocation7]  }
  0x59   : > { %224 = vst [vmem:[%s197_s20 + $0x10] sm:$0xff] %v216_v8  ;;  %v219_v17 = vadd.f32 %v211_v15, %v203_v14  ;;  %v212_v19 = vld [vmem:[%s719_s29 + $0x30] sm:$0xff]  ;;  %v205_v20 = vld [vmem:[%s712_s30 + $0x38] sm:$0xff]  ;;  %p472_p7 = pnand %p471_p13, %p804_p3  ;;  %s474_s19 = sshll.u32 %s544_s17, 4  ;;  %s475_s19 = int_to_ptr.vmem [resolvable:$false] %s474_s19 }
  0x5a   : > { %225 = vst [vmem:[%s197_s20 + $0x18] sm:$0xff] %v217_v12  ;;  %v220_v21 = vadd.f32 %v212_v19, %v204_v18  ;;  %v213_v22 = vld [vmem:[%s719_s29 + $0x38] sm:$0xff]  ;;  %226 = vst [vmem:[%s197_s20 + $0x20] sm:$0xff] %v218_v16  ;;  %s476_s23 = scalar_lea.vmem %s475_s19, 2048  ;;  %p477_p8 = scmp.lt.s32.totalorder %s747_s14, %s475_s19 }
  0x5b   : > { %227 = vst [vmem:[%s197_s20 + $0x28] sm:$0xff] %v219_v17  ;;  %v221_v23 = vadd.f32 %v213_v22, %v205_v20  ;;  %p473_p5 = pneg %p472_p7  ;;  %p478_p9 = scmp.lt.s32.totalorder %s476_s23, %s470_s24 }
  0x5c   : > { %228 = vst [vmem:[%s197_s20 + $0x30] sm:$0xff] %v220_v21 }
  0x5d   : > { %229 = vst [vmem:[%s197_s20 + $0x38] sm:$0xff] %v221_v23  ;;  %p479_p0 = por %p478_p9, %p477_p8 }
  0x5f   : > { %p480_p1 = pnand %p479_p0, %p473_p5 }
  0x61   : > { %483 = shalt.err (!%p480_p1)
}
  0x62   : > { %s484_s25 = scalar_lea.hbm %s745_s13, 1024  ;;  %s488_s5 = scalar_lea.hbm %s791_s2, 2048 }
  0x63   : > { %p485_p11 = scmp.ne.s32.totalorder %s745_s13, %s484_s25  ;;  %p489_p4 = scmp.lt.u32.totalorder %s745_s13, %s791_s2 }
  0x64   : > { %p490_p10 = scmp.lt.u32.totalorder %s488_s5, %s484_s25  ;;  %p492_p13 = scmp.lt.u32.totalorder %s484_s25, %s745_s13 }
  0x65   : > { %p486_p12 = pnand %p485_p11, %p804_p3 }
  0x66   : > { %p491_p6 = por %p490_p10, %p489_p4 }
  0x67   : > { %p487_p2 = pneg %p486_p12 }
  0x68   : > { %p493_p7 = por %p492_p13, %p491_p6 }
  0x6a   : > { %p494_p5 = pnand %p493_p7, %p487_p2 }
  0x6c   : > { %497 = shalt.err (!%p494_p5)
}
  0x6d   : > { %363 = dma.vmem_to_hbm [thread:$0]  (%p804_p3), %s747_s14, 1024, %s745_s13, %s231_s16  }
  0x6e PF: > { %s257_s30 = sand.u32 1, %s528_s9   ;;  %p805_p8 = scmp.ne.s32.totalorder %s797_s22, 0 }
  0x6f   : > { %p806_p9 = scmp.ge.s32.totalorder %s540_s12, 2  ;;  %s258_s3 = scalar_lea.sflag [#allocation4], %s257_s30 }
  0x71   : > { %p373_p0 = pnand %p806_p9, %p805_p8 }
  0x73   : > { %523 = dma.done.wait (!%p373_p0), %s258_s3, 1024  }
  0x74   : > { %525 = vsyncadd (!%p373_p0), %s258_s3, 4294966272  ;;  %p18_p1 = scmp.ge.s32.totalorder %s585_s15, 4   ;;  %s807_s9 = smov %s532_s10 }
  0x75   : > { %s808_s10 = smov %s536_s11  ;;  %s809_s11 = smov %s597_s18 }
  0x76   : > { %s810_s12 = smov %s585_s15  ;;  %20 = sbr.rel (!%p18_p1) target bundleno = 7 (0x7), region = 86 }
  0x7d   :  { %263 = vsyncpa [#allocation3], 1 }
  0x7e   :  { %265 = vsyncpa [#allocation3 + $0x1], 1 }
  0x7f   :  { %266 = vsyncpa [#allocation6], 1 }
  0x80   :  { %268 = vsyncpa [#allocation6 + $0x1], 1 }
  0x81   :  { %269 = vsyncpa [#allocation4], 1 }
  0x82   :  { %271 = vsyncpa [#allocation4 + $0x1], 1 }

</bundles_post_ra>
